<compile_context>
chip_gen: v7x
topology: tpu7x:2x2x1
jax: 0.10.0
libtpu: 0.0.40
codegen_flags: <defaults>
</compile_context>

<pallas_src>
import jax
import jax.numpy as jnp
from jax.experimental import pallas as pl
from jax.experimental.pallas import tpu as pltpu


def _round_up(x, m):
    return ((x + m - 1) // m) * m


# ----------------------------------------------------------------------------
# Kernel: one (TB, ·) batch tile -> (1, 1, TB) lane-dense Q-values.
# Weights use constant index_maps and remain VMEM-resident across grid steps.
# ----------------------------------------------------------------------------
def critic_kernel(s_ref, a_ref, w1s_ref, w1a_ref, b1_ref,
                  w2_ref, b2_ref, w3_ref, b3_ref, o_ref):
    # fc1 + ReLU.  cat(state,action) @ W1  ==  state @ W1[:S] + action @ W1[S:]
    s = s_ref[...].astype(jnp.bfloat16)
    a = a_ref[...].astype(jnp.bfloat16)
    h1 = (jnp.dot(s, w1s_ref[...], preferred_element_type=jnp.float32)
          + jnp.dot(a, w1a_ref[...], preferred_element_type=jnp.float32)
          + b1_ref[...])
    # Cast to bf16 right away: keeps the live intermediate (and any VMEM
    # spill of it) half-width -- matters on v5e's single vector-store slot.
    h1 = jnp.maximum(h1, 0.0).astype(jnp.bfloat16)

    # fc2 + ReLU (bf16 MXU, f32 accumulation).
    h2 = jnp.dot(h1, w2_ref[...], preferred_element_type=jnp.float32) + b2_ref[...]
    h2 = jnp.maximum(h2, 0.0)

    # Output head: N=1 matmul replaced by VPU multiply + lane reduction.
    # Fold the two 128-lane halves with a VPU add first (halves XLU work).
    h2w = h2 * w3_ref[...].astype(jnp.float32)           # (tb, 256) VPU
    half = h2w.shape[-1] // 2
    if half % 128 == 0:
        h2w = h2w[:, :half] + h2w[:, half:]               # (tb, 128) VPU
    q = jnp.sum(h2w, axis=-1, keepdims=True) + b3_ref[...]  # (tb, 1) f32

    # Lane-dense store: (tb,1) -> (1,tb) (cheap XLU relayout; XLU is idle).
    tb = q.shape[0]
    o_ref[...] = jnp.transpose(q).reshape(1, 1, tb).astype(o_ref.dtype)


# ----------------------------------------------------------------------------
# Wrapper
# ----------------------------------------------------------------------------
def critic_forward(state, action, params, *, tb=None, tb_max=1024):
    """state: (B, S_full) f32, action: (B, A_full) f32; returns (B, 1) f32."""
    w1s, w1a, b1, w2, b2, w3, b3 = params
    B = state.shape[0]
    s_dim = state.shape[1]
    a_dim = action.shape[1]
    h1_pad = w1s.shape[1]
    h2_pad = w2.shape[1]

    # Tile sizing: as few grid steps as possible (per-step overhead ~0.35us),
    # but keep >= 2 steps when the batch allows so v7x's 2 TCs both get work.
    if tb is None:
        b8 = _round_up(B, 8)
        tb = min(tb_max, b8)
        if b8 // tb < 2 and b8 >= 16:
            tb = _round_up(pl.cdiv(b8, 2), 8)
    else:
        tb = _round_up(tb, 8)
    b_pad = pl.cdiv(B, tb) * tb
    nt = b_pad // tb

    # Only pad when strictly needed (no concat / cast materialization here).
    if b_pad != B:
        state = jnp.pad(state, ((0, b_pad - B), (0, 0)))
        action = jnp.pad(action, ((0, b_pad - B), (0, 0)))

    const = lambda arr: pl.BlockSpec(arr.shape, lambda i: (0,) * arr.ndim)

    flops = 2 * b_pad * (s_dim * h1_pad + a_dim * h1_pad + h1_pad * h2_pad + h2_pad)
    bytes_accessed = int(
        state.size * state.dtype.itemsize
        + action.size * action.dtype.itemsize
        + sum(int(p.size) * p.dtype.itemsize for p in params)
        + b_pad * 4)

    q = pl.pallas_call(
        critic_kernel,
        out_shape=jax.ShapeDtypeStruct((nt, 1, tb), jnp.float32),
        grid=(nt,),
        in_specs=[
            pl.BlockSpec((tb, s_dim), lambda i: (i, 0)),   # state tile
            pl.BlockSpec((tb, a_dim), lambda i: (i, 0)),   # action tile
            const(w1s), const(w1a), const(b1),             # weights: VMEM-resident
            const(w2), const(b2),
            const(w3), const(b3),
        ],
        out_specs=pl.BlockSpec((1, 1, tb), lambda i: (i, 0, 0)),  # lane-dense
        compiler_params=pltpu.CompilerParams(
            dimension_semantics=("parallel",)),            # shards over 2 TCs on v7x
        cost_estimate=pl.CostEstimate(
            flops=flops, transcendentals=0, bytes_accessed=bytes_accessed),
    )(state, action, w1s, w1a, b1, w2, b2, w3, b3)

    # (nt, 1, tb) row-major flatten == batch order.  Padded rows (garbage Q
    # from the biases) are sliced off here -- keep this slice.
    return q.reshape(b_pad, 1)[:B]


# ----------------------------------------------------------------------------
# Params: mirror the PyTorch init on the true shapes, split W1 into its
# state/action row blocks, zero-pad hidden dims to MXU-native 256 lanes,
# store weights in bf16 (biases stay f32).
# ----------------------------------------------------------------------------
def init_params(key, state_full, action_full, h1=200, h2=150,
                h1_pad=256, h2_pad=256):
    d_in = state_full + action_full  # == (state_size + action_size) * 2
    k = jax.random.split(key, 6)

    # hidden_init in the reference uses fan_in = weight.size()[0] == out_features
    lim1 = 1.0 / jnp.sqrt(float(h1))
    lim2 = 1.0 / jnp.sqrt(float(h2))

    w1 = jax.random.uniform(k[0], (d_in, h1), jnp.float32, -lim1, lim1)
    b1 = jax.random.uniform(k[1], (h1,), jnp.float32, -lim1, lim1)
    w2 = jax.random.uniform(k[2], (h1, h2), jnp.float32, -lim2, lim2)
    b2 = jax.random.uniform(k[3], (h2,), jnp.float32, -lim2, lim2)
    w3 = jax.random.uniform(k[4], (h2,), jnp.float32, -0.003, 0.003)
    b3 = jax.random.uniform(k[5], (1,), jnp.float32, -0.003, 0.003)

    # Zero-pad hidden dims (exact: relu(0)=0, padded W2/W3 entries are 0).
    w1p = jnp.pad(w1, ((0, 0), (0, h1_pad - h1))).astype(jnp.bfloat16)
    w1s = w1p[:state_full]                                               # (S, 256)
    w1a = w1p[state_full:]                                               # (A, 256)
    b1p = jnp.pad(b1, (0, h1_pad - h1)).reshape(1, h1_pad)               # f32
    w2p = jnp.pad(w2, ((0, h1_pad - h1), (0, h2_pad - h2))).astype(jnp.bfloat16)
    b2p = jnp.pad(b2, (0, h2_pad - h2)).reshape(1, h2_pad)               # f32
    w3p = jnp.pad(w3.reshape(1, h2), ((0, 0), (0, h2_pad - h2))).astype(jnp.bfloat16)
    b3p = b3.reshape(1, 1)                                               # f32
    return (w1s, w1a, b1p, w2p, b2p, w3p, b3p)


# ----------------------------------------------------------------------------
# Pure-JAX reference mirroring the kernel's dtype strategy (bf16 MXU inputs,
# f32 accumulation) for a tight correctness check.
# ----------------------------------------------------------------------------
def critic_reference(state, action, params):
    w1s, w1a, b1, w2, b2, w3, b3 = params
    s = state.astype(jnp.bfloat16)
    a = action.astype(jnp.bfloat16)
    h1 = jnp.maximum(
        jnp.dot(s, w1s, preferred_element_type=jnp.float32)
        + jnp.dot(a, w1a, preferred_element_type=jnp.float32) + b1, 0.0)
    h2 = jnp.maximum(
        jnp.dot(h1.astype(jnp.bfloat16), w2,
                preferred_element_type=jnp.float32) + b2, 0.0)
    q = jnp.sum(h2 * w3.astype(jnp.float32), axis=-1, keepdims=True) + b3
    return q


if __name__ == "__main__":
    # Shapes consistent with the module: per-agent state_size=12, action_size=4,
    # two agents concatenated -> state (B, 24), action (B, 8), fc1 in = 32.
    state_size, action_size = 12, 4
    state_full, action_full = 2 * state_size, 2 * action_size
    B = 128  # small demo batch; tile sizing gives grid=(2,) -> batched path

    key = jax.random.PRNGKey(0)
    k_s, k_a, k_p = jax.random.split(key, 3)

    state = jax.random.normal(k_s, (B, state_full), jnp.float32)
    action = jax.random.uniform(k_a, (B, action_full), jnp.float32, -1.0, 1.0)
    params = init_params(k_p, state_full, action_full)

    q = critic_forward(state, action, params)
    jax.block_until_ready(q)

    q_ref = critic_reference(state, action, params)
    assert q.shape == (B, 1)
    assert jnp.allclose(q, q_ref, atol=1e-4, rtol=1e-4), "mismatch vs reference"

    print("KERNEL_OK")
</pallas_src>

<mosaic_0001>
module attributes {stable_mosaic.version = 11 : i64} {
  func.func @critic_kernel(%arg0: i32, %arg1: memref<64x24xf32, #tpu.memory_space<vmem>>, %arg2: memref<64x8xf32, #tpu.memory_space<vmem>>, %arg3: memref<24x256xbf16, #tpu.memory_space<vmem>>, %arg4: memref<8x256xbf16, #tpu.memory_space<vmem>>, %arg5: memref<1x256xf32, #tpu.memory_space<vmem>>, %arg6: memref<256x256xbf16, #tpu.memory_space<vmem>>, %arg7: memref<1x256xf32, #tpu.memory_space<vmem>>, %arg8: memref<1x256xbf16, #tpu.memory_space<vmem>>, %arg9: memref<1x1xf32, #tpu.memory_space<vmem>>, %arg10: memref<1x1x64xf32, #tpu.memory_space<vmem>>) attributes {dimension_semantics = [#tpu.dimension_semantics<parallel>], iteration_bounds = array<i64: 2>, scalar_prefetch = 0 : i64, scratch_operands = 0 : i64, tpu.core_type = #tpu.core_type<tc>, window_params = [{transform_indices = @transform_0, window_bounds = array<i64: 64, 24>}, {transform_indices = @transform_1, window_bounds = array<i64: 64, 8>}, {pipeline_mode = #tpu.pipeline_mode<synchronous>, transform_indices = @transform_2, window_bounds = array<i64: 24, 256>}, {pipeline_mode = #tpu.pipeline_mode<synchronous>, transform_indices = @transform_3, window_bounds = array<i64: 8, 256>}, {pipeline_mode = #tpu.pipeline_mode<synchronous>, transform_indices = @transform_4, window_bounds = array<i64: 1, 256>}, {pipeline_mode = #tpu.pipeline_mode<synchronous>, transform_indices = @transform_5, window_bounds = array<i64: 256, 256>}, {pipeline_mode = #tpu.pipeline_mode<synchronous>, transform_indices = @transform_6, window_bounds = array<i64: 1, 256>}, {pipeline_mode = #tpu.pipeline_mode<synchronous>, transform_indices = @transform_7, window_bounds = array<i64: 1, 256>}, {pipeline_mode = #tpu.pipeline_mode<synchronous>, transform_indices = @transform_8, window_bounds = array<i64: 1, 1>}, {transform_indices = @transform_9, window_bounds = array<i64: 1, 1, 64>}]} {
    %c0 = arith.constant 0 : index
    %c0_0 = arith.constant 0 : index
    %0 = vector.load %arg1[%c0, %c0_0] : memref<64x24xf32, #tpu.memory_space<vmem>>, vector<64x24xf32>
    %1 = arith.truncf %0 : vector<64x24xf32> to vector<64x24xbf16>
    %c0_1 = arith.constant 0 : index
    %c0_2 = arith.constant 0 : index
    %2 = vector.load %arg2[%c0_1, %c0_2] : memref<64x8xf32, #tpu.memory_space<vmem>>, vector<64x8xf32>
    %3 = arith.truncf %2 : vector<64x8xf32> to vector<64x8xbf16>
    %c0_3 = arith.constant 0 : index
    %c0_4 = arith.constant 0 : index
    %4 = vector.load %arg3[%c0_3, %c0_4] : memref<24x256xbf16, #tpu.memory_space<vmem>>, vector<24x256xbf16>
    %cst = arith.constant dense<0.000000e+00> : vector<64x256xf32>
    %5 = tpu.matmul %1, %4, %cst {dimension_numbers = #tpu.dot_dimension_numbers<[1], [0], [0], [1], [0, 0, 1, 1], [], []>} : vector<64x24xbf16>, vector<24x256xbf16>, vector<64x256xf32> -> vector<64x256xf32>
    %c0_5 = arith.constant 0 : index
    %c0_6 = arith.constant 0 : index
    %6 = vector.load %arg4[%c0_5, %c0_6] : memref<8x256xbf16, #tpu.memory_space<vmem>>, vector<8x256xbf16>
    %cst_7 = arith.constant dense<0.000000e+00> : vector<64x256xf32>
    %7 = tpu.matmul %3, %6, %cst_7 {dimension_numbers = #tpu.dot_dimension_numbers<[1], [0], [0], [1], [0, 0, 1, 1], [], []>} : vector<64x8xbf16>, vector<8x256xbf16>, vector<64x256xf32> -> vector<64x256xf32>
    %8 = arith.addf %5, %7 : vector<64x256xf32>
    %c0_8 = arith.constant 0 : index
    %c0_9 = arith.constant 0 : index
    %9 = vector.load %arg5[%c0_8, %c0_9] : memref<1x256xf32, #tpu.memory_space<vmem>>, vector<1x256xf32>
    %10 = vector.broadcast %9 : vector<1x256xf32> to vector<64x256xf32>
    %11 = arith.addf %8, %10 : vector<64x256xf32>
    %cst_10 = arith.constant 0.000000e+00 : f32
    %12 = vector.broadcast %cst_10 : f32 to vector<64x256xf32>
    %13 = arith.maximumf %11, %12 : vector<64x256xf32>
    %14 = arith.truncf %13 : vector<64x256xf32> to vector<64x256xbf16>
    %c0_11 = arith.constant 0 : index
    %c0_12 = arith.constant 0 : index
    %15 = vector.load %arg6[%c0_11, %c0_12] : memref<256x256xbf16, #tpu.memory_space<vmem>>, vector<256x256xbf16>
    %cst_13 = arith.constant dense<0.000000e+00> : vector<64x256xf32>
    %16 = tpu.matmul %14, %15, %cst_13 {dimension_numbers = #tpu.dot_dimension_numbers<[1], [0], [0], [1], [0, 0, 1, 1], [], []>} : vector<64x256xbf16>, vector<256x256xbf16>, vector<64x256xf32> -> vector<64x256xf32>
    %c0_14 = arith.constant 0 : index
    %c0_15 = arith.constant 0 : index
    %17 = vector.load %arg7[%c0_14, %c0_15] : memref<1x256xf32, #tpu.memory_space<vmem>>, vector<1x256xf32>
    %18 = vector.broadcast %17 : vector<1x256xf32> to vector<64x256xf32>
    %19 = arith.addf %16, %18 : vector<64x256xf32>
    %cst_16 = arith.constant 0.000000e+00 : f32
    %20 = vector.broadcast %cst_16 : f32 to vector<64x256xf32>
    %21 = arith.maximumf %19, %20 : vector<64x256xf32>
    %c0_17 = arith.constant 0 : index
    %c0_18 = arith.constant 0 : index
    %22 = vector.load %arg8[%c0_17, %c0_18] : memref<1x256xbf16, #tpu.memory_space<vmem>>, vector<1x256xbf16>
    %23 = arith.extf %22 : vector<1x256xbf16> to vector<1x256xf32>
    %24 = vector.broadcast %23 : vector<1x256xf32> to vector<64x256xf32>
    %25 = arith.mulf %21, %24 : vector<64x256xf32>
    %26 = vector.extract_strided_slice %25 {offsets = [0, 0], sizes = [64, 128], strides = [1, 1]} : vector<64x256xf32> to vector<64x128xf32>
    %27 = vector.extract_strided_slice %25 {offsets = [0, 128], sizes = [64, 128], strides = [1, 1]} : vector<64x256xf32> to vector<64x128xf32>
    %28 = arith.addf %26, %27 : vector<64x128xf32>
    %cst_19 = arith.constant dense<0.000000e+00> : vector<64xf32>
    %29 = vector.multi_reduction <add>, %28, %cst_19 [1] : vector<64x128xf32> to vector<64xf32>
    %30 = vector.shape_cast %29 : vector<64xf32> to vector<64x1xf32>
    %c0_20 = arith.constant 0 : index
    %c0_21 = arith.constant 0 : index
    %31 = vector.load %arg9[%c0_20, %c0_21] : memref<1x1xf32, #tpu.memory_space<vmem>>, vector<1x1xf32>
    %32 = vector.broadcast %31 : vector<1x1xf32> to vector<64x1xf32>
    %33 = arith.addf %30, %32 : vector<64x1xf32>
    %34 = tpu.transpose %33, [1, 0] : vector<64x1xf32> -> vector<1x64xf32>
    %35 = vector.shape_cast %34 : vector<1x64xf32> to vector<1x1x64xf32>
    %c0_22 = arith.constant 0 : index
    %c0_23 = arith.constant 0 : index
    %c0_24 = arith.constant 0 : index
    %36 = vector.load %arg10[%c0_22, %c0_23, %c0_24] : memref<1x1x64xf32, #tpu.memory_space<vmem>>, vector<1x1x64xf32>
    tpu.vector_store %arg10[%c0_22, %c0_23, %c0_24], %35 {strides = array<i32>} : memref<1x1x64xf32, #tpu.memory_space<vmem>>, vector<1x1x64xf32>,
    return
  }
  func.func @transform_0(%arg0: i32) -> (i32, i32) {
    %c0_i32 = arith.constant 0 : i32
    %c0_i32_0 = arith.constant 0 : i32
    return %arg0, %c0_i32 : i32, i32
  }
  func.func @transform_1(%arg0: i32) -> (i32, i32) {
    %c0_i32 = arith.constant 0 : i32
    %c0_i32_0 = arith.constant 0 : i32
    return %arg0, %c0_i32 : i32, i32
  }
  func.func @transform_2(%arg0: i32) -> (i32, i32) {
    %c0_i32 = arith.constant 0 : i32
    %c0_i32_0 = arith.constant 0 : i32
    %c0_i32_1 = arith.constant 0 : i32
    return %c0_i32, %c0_i32_0 : i32, i32
  }
  func.func @transform_3(%arg0: i32) -> (i32, i32) {
    %c0_i32 = arith.constant 0 : i32
    %c0_i32_0 = arith.constant 0 : i32
    %c0_i32_1 = arith.constant 0 : i32
    return %c0_i32, %c0_i32_0 : i32, i32
  }
  func.func @transform_4(%arg0: i32) -> (i32, i32) {
    %c0_i32 = arith.constant 0 : i32
    %c0_i32_0 = arith.constant 0 : i32
    %c0_i32_1 = arith.constant 0 : i32
    return %c0_i32, %c0_i32_0 : i32, i32
  }
  func.func @transform_5(%arg0: i32) -> (i32, i32) {
    %c0_i32 = arith.constant 0 : i32
    %c0_i32_0 = arith.constant 0 : i32
    %c0_i32_1 = arith.constant 0 : i32
    return %c0_i32, %c0_i32_0 : i32, i32
  }
  func.func @transform_6(%arg0: i32) -> (i32, i32) {
    %c0_i32 = arith.constant 0 : i32
    %c0_i32_0 = arith.constant 0 : i32
    %c0_i32_1 = arith.constant 0 : i32
    return %c0_i32, %c0_i32_0 : i32, i32
  }
  func.func @transform_7(%arg0: i32) -> (i32, i32) {
    %c0_i32 = arith.constant 0 : i32
    %c0_i32_0 = arith.constant 0 : i32
    %c0_i32_1 = arith.constant 0 : i32
    return %c0_i32, %c0_i32_0 : i32, i32
  }
  func.func @transform_8(%arg0: i32) -> (i32, i32) {
    %c0_i32 = arith.constant 0 : i32
    %c0_i32_0 = arith.constant 0 : i32
    %c0_i32_1 = arith.constant 0 : i32
    return %c0_i32, %c0_i32_0 : i32, i32
  }
  func.func @transform_9(%arg0: i32) -> (i32, i32, i32) {
    %c0_i32 = arith.constant 0 : i32
    %c0_i32_0 = arith.constant 0 : i32
    %c0_i32_1 = arith.constant 0 : i32
    return %arg0, %c0_i32, %c0_i32_0 : i32, i32, i32
  }
}

</mosaic_0001>

<bundles_post_ra>
// kernel: tpu_custom_call.1
= control target key start
LH: loop header
LB: loop body
LE: loop exit
PB: predicated region body
PF: predicated region fallthrough
CT: control target
= control target key end

     0   :  { %s1738_s0 = inlined_call_operand.vmem [shape: f32[128,24], index: 0, kind: input, shape index: {}]   ;;  %s1739_s1 = inlined_call_operand.vmem [shape: f32[128,8], index: 1, kind: input, shape index: {}]   ;;  %s1740_s2 = inlined_call_operand.vmem [shape: bf16[24,256], index: 2, kind: input, shape index: {}]   ;;  %s1741_s3 = inlined_call_operand.vmem [shape: bf16[8,256], index: 3, kind: input, shape index: {}]   ;;  %s1742_s4 = inlined_call_operand.vmem [shape: f32[1,256], index: 4, kind: input, shape index: {}]   ;;  %s1743_s5 = inlined_call_operand.vmem [shape: bf16[256,256], index: 5, kind: input, shape index: {}]   ;;  %s1744_s6 = inlined_call_operand.vmem [shape: f32[1,256], index: 6, kind: input, shape index: {}]   ;;  %s1745_s7 = inlined_call_operand.vmem [shape: bf16[1,256], index: 7, kind: input, shape index: {}]   ;;  %s1746_s8 = inlined_call_operand.<no memory space> [shape: f32[1,1], index: 8, kind: input, shape index: {}]   ;;  %s1747_s9 = inlined_call_operand.hbm [shape: f32[2,1,64], index: 9, kind: output, shape index: {}]  }
   0x1   :  { %v14_v0 = vstv %s1746_s8 }
   0x2   :  { %15 = vst [vmem:[#allocation2] sm:$0x1] %v14_v0 }
   0x3   :  { %16 = vsyncpa [#allocation4], 0 }
   0x4   :  { %18 = vsyncpa [#allocation4 + $0x1], 0  ;;  %s1416_s11 = smov 0   ;;  %s1418_s12 = smov 0  }
   0x5   :  { %s1420_s13 = smov 0   ;;  %s1422_s14 = smov 0  }
   0x6 LB: > { %s1437_s8 = sadd.s32 4294967295, %s1359_s14   ;;  %s1125_s15 = sadd.s32 4294967294, %s1359_s14   ;;  %s1359_s14 = sphi %s1422_s14, %s1753_s14   ;;  %s1355_s13 = sphi %s1420_s13, %s1752_s13   ;;  %s1351_s12 = sphi %s1418_s12, %s1751_s12   ;;  %s1347_s11 = sphi %s1416_s11, %s1750_s11  }
   0x7   : > { %s1441_s16 = sadd.s32 1, %s1359_s14   ;;  %s230_s17 = sadd.s32 1, %s1355_s13 }
   0x8   : > { %s227_s18 = ssub.s32 %s1359_s14, %s1441_s16  ;;  %p240_p0 = scmp.ne.s32.totalorder %s1355_s13, %s1351_s12 }
   0x9   : > { %p228_p1 = scmp.eq.s32.totalorder %s227_s18, 0  ;;  %p241_p2 = scmp.eq.s32.totalorder %s1437_s8, 1 }
   0xa   : > { %p246_p3 = scmp.ne.s32.totalorder %s1351_s12, %s1347_s11  ;;  %p247_p4 = scmp.eq.s32.totalorder %s1125_s15, 1 }
   0xb   : > { %s1452_s19 = scalar_select %p228_p1, %s1355_s13, %s230_s17  }
   0xc   : > { %p1454_p5 = por %p241_p2, %p240_p0  ;;  %p1458_p6 = por %p247_p4, %p246_p3 }
   0xd   : > { %p1128_p7 = scmp.ge.s32.totalorder %s1359_s14, 1  ;;  %p304_p8 = scmp.lt.s32.totalorder %s1359_s14, 3 }
   0xf   : > { %p305_p9 = pnand %p1128_p7, %p304_p8 }
  0x10   : > { %v384_v1 = vld [vmem:[%s1741_s3] sm:$0xff] (!%p305_p9)  ;;  %vm403_vm0 = vcmask (!%p305_p9), 1043456   ;;  %s1129_s24 = sshll.u32 (!%p305_p9), %s1437_s8, 3  ;;  %v1361_v4 = vmov (!%p305_p9), 0   ;;  %v1252_v9 = vld [vmem:[%s1743_s5 + $0x14] ss:$8 sps:$4 sm:$0xff] (!%p305_p9)  }
  0x11   : > { %308 = sbr.rel (%p305_p9) target bundleno = 792 (0x318), region = 56  ;;  %v1134_v2 = vcombine.high (!%p305_p9), %v384_v1, %v384_v1  ;;  %v1133_v3 = vcombine.low (!%p305_p9), %v384_v1, %v384_v1  ;;  %442 = vmatprep.mubr.bf16.mxu0 (!%p305_p9), %v1361_v4  ;;  %v1246_v5 = vld [vmem:[%s1740_s2 + $0x4] ss:$8 sps:$4 sm:$0xff] (!%p305_p9)   ;;  %p345_p10 = scmp.lt.s32.totalorder (!%p305_p9), %s1129_s24, 15  ;;  %v1251_v8 = vld [vmem:[%s1743_s5] ss:$8 sps:$4 sm:$0xff] (!%p305_p9)  }
  0x12   : > { %v1249_v7 = vld [vmem:[%s1743_s5 + $0x4] ss:$8 sps:$4 sm:$0xff] (!%p305_p9)   ;;  %v383_v10 = vld [vmem:[%s1740_s2 + $0x10] sm:$0xff] (!%p305_p9)  ;;  %v1244_v12 = vld [vmem:[%s1740_s2] ss:$8 sps:$4 sm:$0xff] (!%p305_p9)   ;;  %vm390_vm1 = vcmask (!%p305_p9), 64512  }
  0x13   : > { %1135 = vmatprep.subr.msk.bf16.mxu0 (!%p305_p9), %vm403_vm0, %v1134_v2  ;;  %v405_v6 = vsel (!%p305_p9), %vm403_vm0, %v1133_v3, 0  ;;  %846 = vmatprep.subr.bf16.mxu1 (!%p305_p9), %v1249_v7  ;;  %v1254_v11 = vld [vmem:[%s1743_s5 + $0x10] ss:$8 sps:$4 sm:$0xff] (!%p305_p9)   ;;  %v1143_v16 = vcombine.high (!%p305_p9), %v383_v10, %v383_v10  ;;  %v1142_v17 = vcombine.low (!%p305_p9), %v383_v10, %v383_v10  ;;  %v1255_v18 = vld [vmem:[%s1743_s5 + $0x24] ss:$8 sps:$4 sm:$0xff] (!%p305_p9)   ;;  %vm498_vm2 = vcmask (!%p305_p9), 195584  }
  0x14   : > { %411 = vmatpush1.bf16.msra.mxu0 (!%p305_p9), %v405_v6  ;;  %847 = vmatpush1.bf16.msra.mxu1 (!%p305_p9), %v1251_v8  ;;  %v1257_v19 = vld [vmem:[%s1743_s5 + $0x20] ss:$8 sps:$4 sm:$0xff] (!%p305_p9)   ;;  %v1258_v23 = vld [vmem:[%s1743_s5 + $0x34] ss:$8 sps:$4 sm:$0xff] (!%p305_p9)   ;;  %v1260_v25 = vld [vmem:[%s1743_s5 + $0x30] ss:$8 sps:$4 sm:$0xff] (!%p305_p9)  }
  0x15   : > { %517 = vmatprep.subr.bf16.mxu0 (!%p305_p9), %v1246_v5  ;;  %848 = vmatprep.subr.bf16.mxu1 (!%p305_p9), %v1252_v9  ;;  %v512_v22 = vsel (!%p305_p9), %vm403_vm0, %v1142_v17, 0  ;;  %v1261_v26 = vld [vmem:[%s1743_s5 + $0x44] ss:$8 sps:$4 sm:$0xff] (!%p305_p9)   ;;  %v1263_v28 = vld [vmem:[%s1743_s5 + $0x40] ss:$8 sps:$4 sm:$0xff] (!%p305_p9)   ;;  %s342_s27 = sand.u32 (!%p305_p9), 1, %s1351_s12  }
  0x16   : > { %v1264_v30 = vld [vmem:[%s1743_s5 + $0x54] ss:$8 sps:$4 sm:$0xff] (!%p305_p9)   ;;  %v1266_v32 = vld [vmem:[%s1743_s5 + $0x50] ss:$8 sps:$4 sm:$0xff] (!%p305_p9)   ;;  %v1267_v33 = vld [vmem:[%s1743_s5 + $0x64] ss:$8 sps:$4 sm:$0xff] (!%p305_p9)  }
  0x17   : > { %v1269_v36 = vld [vmem:[%s1743_s5 + $0x60] ss:$8 sps:$4 sm:$0xff] (!%p305_p9)   ;;  %v1270_v37 = vld [vmem:[%s1743_s5 + $0x74] ss:$8 sps:$4 sm:$0xff] (!%p305_p9)   ;;  %v1272_v39 = vld [vmem:[%s1743_s5 + $0x70] ss:$8 sps:$4 sm:$0xff] (!%p305_p9)  }
  0x18   : > { %s1755_s24 = smov (!%p345_p10, %s1129_s24), 15  ;;  %849 = vmatpush1.bf16.msra.mxu1 %v1254_v11  ;;  %v1273_v40 = vld [vmem:[%s1743_s5 + $0x84] ss:$8 sps:$4 sm:$0xff]   ;;  %v1275_v41 = vld [vmem:[%s1743_s5 + $0x80] ss:$8 sps:$4 sm:$0xff]   ;;  %s1182_s29 = sshll.u32 %s1437_s8, 4 }
  0x19   : > { %s1130_s17 = sshll.u32 %s1755_s24, 3  ;;  %850 = vmatprep.subr.bf16.mxu1 %v1255_v18  ;;  %v1276_v44 = vld [vmem:[%s1743_s5 + $0x94] ss:$8 sps:$4 sm:$0xff]   ;;  %v1278_v46 = vld [vmem:[%s1743_s5 + $0x90] ss:$8 sps:$4 sm:$0xff]   ;;  %s343_s30 = scalar_lea.vmem [#allocation3], %s342_s27 }
  0x1a   : > { %s1494_s26 = scalar_lea.vmem %s1739_s1, %s1130_s17  ;;  %s1562_s28 = scalar_lea.vmem %s1738_s0, %s1130_s17  ;;  %v1279_v47 = vld [vmem:[%s1743_s5 + $0xa4] ss:$8 sps:$4 sm:$0xff]   ;;  %v1281_v48 = vld [vmem:[%s1743_s5 + $0xa0] ss:$8 sps:$4 sm:$0xff]   ;;  %v1282_v51 = vld [vmem:[%s1743_s5 + $0xb4] ss:$8 sps:$4 sm:$0xff]  }
  0x1b   : > { %v369_v13 = vld [vmem:[%s1494_s26] sm:$0xff]  ;;  %v370_v14 = vld [vmem:[%s1494_s26 + $0x8] sm:$0xff]  ;;  %v371_v20 = vld [vmem:[%s1494_s26 + $0x10] sm:$0xff]  ;;  %s1058_s24 = sshll.u32 %s343_s30, 4  ;;  %vm1043_vm3 = vcmask 516096   ;;  %s1696_s17 = scalar_lea.hbm %s1747_s9, %s1182_s29  ;;  %s1698_s24 = int_to_ptr.vmem [resolvable:$true] %s1058_s24 }
  0x1c   : > { %v377_v15 = vpack.c.bf16 %v370_v14, %v369_v13  ;;  %v372_v21 = vld [vmem:[%s1494_s26 + $0x18] sm:$0xff]  ;;  %851 = vmatpush1.bf16.msra.mxu1 %v1257_v19  ;;  %v373_v27 = vld [vmem:[%s1494_s26 + $0x20] sm:$0xff]  ;;  %v374_v29 = vld [vmem:[%s1494_s26 + $0x28] sm:$0xff]  ;;  %s1046_s15 = scalar_lea.sflag [#allocation4], %s342_s27  ;;  %s1297_s18 = scalar_lea.vmem %s1698_s24, 16 }
  0x1d   : > { %v378_v24 = vpack.c.bf16 %v372_v21, %v371_v20  ;;  %852 = vmatprep.subr.bf16.mxu1 %v1258_v23  ;;  %v379_v31 = vpack.c.bf16 %v374_v29, %v373_v27  ;;  %v375_v34 = vld [vmem:[%s1494_s26 + $0x30] sm:$0xff]  ;;  %v376_v35 = vld [vmem:[%s1494_s26 + $0x38] sm:$0xff]  ;;  %v357_v42 = vld [vmem:[%s1562_s28] sm:$0xff]  ;;  %p1298_p11 = scmp.ne.s32.totalorder %s1698_s24, %s1297_s18  ;;  %s1362_s8 = smov [#allocation3]  }
  0x1e   : > { %1136 = vmatmul.mubr.msk.bf16.vlgmr.msra.gmra.mrb[0].mxu0 %vm390_vm1, %v377_v15  ;;  %v380_v38 = vpack.c.bf16 %v376_v35, %v375_v34  ;;  %v358_v43 = vld [vmem:[%s1562_s28 + $0x8] sm:$0xff]  ;;  %v359_v49 = vld [vmem:[%s1562_s28 + $0x10] sm:$0xff]  ;;  %v360_v50 = vld [vmem:[%s1562_s28 + $0x18] sm:$0xff]  ;;  %s1301_s22 = sshll.u32 %s1362_s8, 4  ;;  %s1302_s22 = int_to_ptr.vmem [resolvable:$false] %s1301_s22 }
  0x1f   : > { %518 = vmatpush1.bf16.msra.mxu0 %v1244_v12  ;;  %452 = vmatprep.mubr.bf16.mxu0 %v1361_v4  ;;  %v365_v45 = vpack.c.bf16 %v358_v43, %v357_v42  ;;  %v366_v52 = vpack.c.bf16 %v360_v50, %v359_v49  ;;  %v1284_v53 = vld [vmem:[%s1743_s5 + $0xb0] ss:$8 sps:$4 sm:$0xff]   ;;  %v1285_v54 = vld [vmem:[%s1743_s5 + $0xc4] ss:$8 sps:$4 sm:$0xff]   ;;  %v1287_v55 = vld [vmem:[%s1743_s5 + $0xc0] ss:$8 sps:$4 sm:$0xff]   ;;  %p1299_p12 = pnand %p1298_p11, %p1454_p5  ;;  %p1304_p0 = scmp.lt.s32.totalorder %s1698_s24, %s1302_s22 }
  0x20   : > { %1144 = vmatprep.subr.msk.bf16.mxu0 %vm403_vm0, %v1143_v16  ;;  %853 = vmatpush1.bf16.msra.mxu1 %v1260_v25  ;;  %v361_v56 = vld [vmem:[%s1562_s28 + $0x20] sm:$0xff]  ;;  %v362_v57 = vld [vmem:[%s1562_s28 + $0x28] sm:$0xff]  ;;  %v1288_v58 = vld [vmem:[%s1743_s5 + $0xd4] ss:$8 sps:$4 sm:$0xff]   ;;  %s1303_s26 = scalar_lea.vmem %s1302_s22, 32 }
  0x21   : > { %854 = vmatprep.subr.bf16.mxu1 %v1261_v26  ;;  %v367_v59 = vpack.c.bf16 %v362_v57, %v361_v56  ;;  %v363_v60 = vld [vmem:[%s1562_s28 + $0x30] sm:$0xff]  ;;  %v364_v61 = vld [vmem:[%s1562_s28 + $0x38] sm:$0xff]  ;;  %v1291_v0 = vld [vmem:[%s1743_s5 + $0xe4] ss:$8 sps:$4 sm:$0xff]   ;;  %p1300_p13 = pneg %p1299_p12  ;;  %p1305_p1 = scmp.lt.s32.totalorder %s1303_s26, %s1297_s18 }
  0x22   : > { %v368_v62 = vpack.c.bf16 %v364_v61, %v363_v60  ;;  %v1290_v63 = vld [vmem:[%s1743_s5 + $0xd0] ss:$8 sps:$4 sm:$0xff]   ;;  %v1293_v1 = vld [vmem:[%s1743_s5 + $0xe0] ss:$8 sps:$4 sm:$0xff]   ;;  %v1294_v2 = vld [vmem:[%s1743_s5 + $0xf4] ss:$8 sps:$4 sm:$0xff]  }
  0x23   : > { %520 = vmatpush1.bf16.msra.mxu0 %v512_v22  ;;  %v1296_v3 = vld [vmem:[%s1743_s5 + $0xf0] ss:$8 sps:$4 sm:$0xff]   ;;  %v590_v7 = vld [vmem:[%s1742_s4] sm:$0x3]  ;;  %p1306_p2 = por %p1305_p1, %p1304_p0 }
  0x24   : > { %855 = vmatpush1.bf16.msra.mxu1 %v1263_v28 }
  0x25   : > { %856 = vmatprep.subr.bf16.mxu1 %v1264_v30  ;;  %p1307_p3 = pnand %p1306_p2, %p1300_p13 }
  0x26   : > { %1137 = vmatmul.mubr.msk.bf16.gmra.mrb[4].mxu0 %vm390_vm1, %v378_v24 }
  0x27   : > { %462 = vmatprep.mubr.bf16.mxu0 %v1361_v4 }
  0x28   : > { %857 = vmatpush1.bf16.msra.mxu1 %v1266_v32 }
  0x29   : > { %858 = vmatprep.subr.bf16.mxu1 %v1267_v33 }
  0x2c   : > { %859 = vmatpush1.bf16.msra.mxu1 %v1269_v36 }
  0x2d   : > { %860 = vmatprep.subr.bf16.mxu1 %v1270_v37 }
  0x2e   : > { %1138 = vmatmul.mubr.msk.bf16.gmra.mrb[8].mxu0 %vm390_vm1, %v379_v31 }
  0x2f   : > { %472 = vmatprep.mubr.bf16.mxu0 %v1361_v4 }
  0x30   : > { %861 = vmatpush1.bf16.msra.mxu1 %v1272_v39 }
  0x31   : > { %862 = vmatprep.subr.bf16.mxu1 %v1273_v40 }
  0x34   : > { %863 = vmatpush1.bf16.msra.mxu1 %v1275_v41 }
  0x35   : > { %864 = vmatprep.subr.bf16.mxu1 %v1276_v44 }
  0x36   : > { %1139 = vmatmul.mubr.msk.bf16.gmra.mrb[12].mxu0 %vm390_vm1, %v380_v38 }
  0x37   : > { %549 = vmatprep.mubr.bf16.mxu0 %v1361_v4 }
  0x38   : > { %865 = vmatpush1.bf16.msra.mxu1 %v1278_v46 }
  0x39   : > { %866 = vmatprep.subr.bf16.mxu1 %v1279_v47 }
  0x3c   : > { %867 = vmatpush1.bf16.msra.mxu1 %v1281_v48 }
  0x3d   : > { %868 = vmatprep.subr.bf16.mxu1 %v1282_v51 }
  0x3e   : > { %1145 = vmatmul.mubr.msk.bf16.vlgmr.msra.gmra.mrb[0].mxu0 %vm498_vm2, %v365_v45 }
  0x3f   : > { %559 = vmatprep.mubr.bf16.mxu0 %v1361_v4 }
  0x40   : > { %869 = vmatpush1.bf16.msra.mxu1 %v1284_v53 }
  0x41   : > { %870 = vmatprep.subr.bf16.mxu1 %v1285_v54 }
  0x44   : > { %871 = vmatpush1.bf16.msra.mxu1 %v1287_v55 }
  0x45   : > { %872 = vmatprep.subr.bf16.mxu1 %v1288_v58 }
  0x46   : > { %1146 = vmatmul.mubr.msk.bf16.gmra.mrb[4].mxu0 %vm498_vm2, %v366_v52 }
  0x47   : > { %569 = vmatprep.mubr.bf16.mxu0 %v1361_v4 }
  0x48   : > { %873 = vmatpush1.bf16.msra.mxu1 %v1290_v63 }
  0x49   : > { %874 = vmatprep.subr.bf16.mxu1 %v1291_v0 }
  0x4c   : > { %875 = vmatpush1.bf16.msra.mxu1 %v1293_v1 }
  0x4d   : > { %876 = vmatprep.subr.bf16.mxu1 %v1294_v2 }
  0x4e   : > { %1147 = vmatmul.mubr.msk.bf16.gmra.mrb[8].mxu0 %vm498_vm2, %v367_v59 }
  0x4f   : > { %579 = vmatprep.mubr.bf16.mxu0 %v1361_v4  ;;  %v592_v4 = vlaneseq }
  0x50   : > { %877 = vmatpush1.bf16.msra.mxu1 %v1296_v3  ;;  %v935_v3 = vld [vmem:[%s1745_s7] sm:$0x3] }
  0x51   : > { %v1626_v5 = vshrl.u32 %v592_v4, 7  ;;  %v936_v4 = vunpack.c.l.bf16 %v935_v3 }
  0x53   : > { %v1629_v6 = vsub.s32 0, %v1626_v5  ;;  %v598_v8 = vsub.s32 1, %v1626_v5 }
  0x55   : > { %v595_v9 = vrot.slane %v590_v7, %v1629_v6  ;;  %v599_v10 = vrot.slane %v590_v7, %v598_v8  ;;  %v674_v7 = vld [vmem:[%s1744_s6] sm:$0x3] }
  0x56   : > { %1148 = vmatmul.mubr.msk.bf16.gmra.mrb[12].mxu0 %vm498_vm2, %v368_v62 }
 0x111   : > { %v551_v11 = vpop.f32.mrb[0].mxu0 }
 0x112   : > { %v602_v12 = vadd.f32 %v595_v9, %v551_v11  ;;  %v553_v13 = vpop.f32.mrb[1].mxu0  ;;  %v941_v11 = vrot.slane %v936_v4, %v1629_v6 }
 0x113   : > { %v603_v14 = vadd.f32 %v599_v10, %v553_v13  ;;  %v555_v15 = vpop.f32.mrb[2].mxu0 }
 0x114   : > { %v604_v16 = vadd.f32 %v595_v9, %v555_v15  ;;  %v557_v17 = vpop.f32.mrb[3].mxu0  ;;  %v618_v19 = vmax.f32 %v602_v12, 0.0  ;;  %v1651_v12 = vrot.slane %v674_v7, %v598_v8 }
 0x115   : > { %v605_v18 = vadd.f32 %v599_v10, %v557_v17  ;;  %v619_v21 = vmax.f32 %v603_v14, 0.0  ;;  %v1655_v17 = vrot.slane %v941_v11, %v1629_v6 }
 0x116   : > { %v620_v20 = vmax.f32 %v604_v16, 0.0 }
 0x117   : > { %v621_v22 = vmax.f32 %v605_v18, 0.0 }
 0x118   : > { %v634_v23 = vpack.c.bf16 %v620_v20, %v618_v19 }
 0x119   : > { %v561_v24 = vpop.f32.mrb[4].mxu0  ;;  %v635_v25 = vpack.c.bf16 %v621_v22, %v619_v21 }
 0x11a   : > { %v606_v26 = vadd.f32 %v595_v9, %v561_v24  ;;  %v563_v27 = vpop.f32.mrb[5].mxu0 }
 0x11b   : > { %v607_v28 = vadd.f32 %v599_v10, %v563_v27  ;;  %v565_v29 = vpop.f32.mrb[6].mxu0  ;;  %878 = vmatprep.mubr.bf16.mxu1 %v635_v25 }
 0x11c   : > { %v608_v30 = vadd.f32 %v595_v9, %v565_v29  ;;  %v567_v31 = vpop.f32.mrb[7].mxu0  ;;  %879 = vmatmul.mubr.bf16.vlgmr.msra.gmra.mrb[0].mxu1 %v634_v23  ;;  %v622_v33 = vmax.f32 %v606_v26, 0.0 }
 0x11d   : > { %v609_v32 = vadd.f32 %v599_v10, %v567_v31  ;;  %v623_v35 = vmax.f32 %v607_v28, 0.0 }
 0x11e   : > { %v624_v34 = vmax.f32 %v608_v30, 0.0 }
 0x11f   : > { %v625_v36 = vmax.f32 %v609_v32, 0.0 }
 0x120   : > { %v636_v37 = vpack.c.bf16 %v624_v34, %v622_v33 }
 0x121   : > { %v637_v38 = vpack.c.bf16 %v625_v36, %v623_v35  ;;  %v571_v39 = vpop.f32.mrb[8].mxu0 }
 0x122   : > { %v610_v40 = vadd.f32 %v595_v9, %v571_v39  ;;  %v573_v41 = vpop.f32.mrb[9].mxu0 }
 0x123   : > { %v611_v42 = vadd.f32 %v599_v10, %v573_v41  ;;  %v575_v43 = vpop.f32.mrb[10].mxu0  ;;  %888 = vmatprep.mubr.bf16.mxu1 %v637_v38 }
 0x124   : > { %v612_v44 = vadd.f32 %v595_v9, %v575_v43  ;;  %v577_v45 = vpop.f32.mrb[11].mxu0  ;;  %889 = vmatmul.mubr.bf16.gmra.mrb[4].mxu1 %v636_v37  ;;  %v626_v47 = vmax.f32 %v610_v40, 0.0 }
 0x125   : > { %v613_v46 = vadd.f32 %v599_v10, %v577_v45  ;;  %v627_v49 = vmax.f32 %v611_v42, 0.0 }
 0x126   : > { %v628_v48 = vmax.f32 %v612_v44, 0.0 }
 0x127   : > { %v629_v50 = vmax.f32 %v613_v46, 0.0 }
 0x128   : > { %v638_v51 = vpack.c.bf16 %v628_v48, %v626_v47 }
 0x129   : > { %v639_v52 = vpack.c.bf16 %v629_v50, %v627_v49  ;;  %v581_v53 = vpop.f32.mrb[12].mxu0 }
 0x12a   : > { %v614_v54 = vadd.f32 %v595_v9, %v581_v53  ;;  %v583_v55 = vpop.f32.mrb[13].mxu0 }
 0x12b   : > { %v615_v56 = vadd.f32 %v599_v10, %v583_v55  ;;  %v585_v57 = vpop.f32.mrb[14].mxu0  ;;  %898 = vmatprep.mubr.bf16.mxu1 %v639_v52 }
 0x12c   : > { %v616_v58 = vadd.f32 %v595_v9, %v585_v57  ;;  %v587_v59 = vpop.f32.mrb[15].mxu0  ;;  %899 = vmatmul.mubr.bf16.gmra.mrb[8].mxu1 %v638_v51  ;;  %v630_v61 = vmax.f32 %v614_v54, 0.0  ;;  %v944_v9 = vsub.s32 2, %v1626_v5 }
 0x12d   : > { %v617_v60 = vadd.f32 %v599_v10, %v587_v59  ;;  %v631_v63 = vmax.f32 %v615_v56, 0.0  ;;  %v1646_v10 = vrot.slane %v674_v7, %v1629_v6 }
 0x12e   : > { %v632_v62 = vmax.f32 %v616_v58, 0.0  ;;  %v945_v13 = vrot.slane %v936_v4, %v944_v9 }
 0x12f   : > { %v633_v0 = vmax.f32 %v617_v60, 0.0 }
 0x130   : > { %v640_v1 = vpack.c.bf16 %v632_v62, %v630_v61  ;;  %v1659_v20 = vrot.slane %v945_v13, %v1629_v6 }
 0x131   : > { %v641_v2 = vpack.c.bf16 %v633_v0, %v631_v63 }
 0x133   : > { %908 = vmatprep.mubr.bf16.mxu1 %v641_v2 }
 0x134   : > { %909 = vmatmul.mubr.bf16.gmra.mrb[12].mxu1 %v640_v1 }
 0x1ef   : > { %v880_v14 = vpop.f32.mrb[0].mxu1 }
 0x1f0   : > { %v881_v15 = vadd.f32 %v880_v14, %v1646_v10  ;;  %v882_v16 = vpop.f32.mrb[1].mxu1 }
 0x1f1   : > { %v883_v18 = vadd.f32 %v882_v16, %v1651_v12  ;;  %v884_v19 = vpop.f32.mrb[2].mxu1 }
 0x1f2   : > { %v919_v21 = vmax.f32 %v881_v15, 0.0  ;;  %v885_v22 = vadd.f32 %v884_v19, %v1646_v10  ;;  %v886_v5 = vpop.f32.mrb[3].mxu1 }
 0x1f3   : > { %v920_v8 = vmax.f32 %v883_v18, 0.0  ;;  %v887_v23 = vadd.f32 %v886_v5, %v1651_v12 }
 0x1f4   : > { %v921_v24 = vmax.f32 %v885_v22, 0.0  ;;  %v956_v25 = vmul.f32 %v1655_v17, %v919_v21 }
 0x1f5   : > { %v922_v26 = vmax.f32 %v887_v23, 0.0  ;;  %v957_v27 = vmul.f32 %v1659_v20, %v920_v8 }
 0x1f6   : > { %v958_v28 = vmul.f32 %v1655_v17, %v921_v24 }
 0x1f7   : > { %v959_v29 = vmul.f32 %v1659_v20, %v922_v26  ;;  %v890_v30 = vpop.f32.mrb[4].mxu1  ;;  %v972_v6 = vadd.f32 %v957_v27, %v956_v25 }
 0x1f8   : > { %v891_v31 = vadd.f32 %v890_v30, %v1646_v10  ;;  %v892_v32 = vpop.f32.mrb[5].mxu1 }
 0x1f9   : > { %v893_v33 = vadd.f32 %v892_v32, %v1651_v12  ;;  %980 = vadd.xlane.f32.xlu0 %v972_v6  ;;  %v894_v34 = vpop.f32.mrb[6].mxu1  ;;  %v973_v35 = vadd.f32 %v959_v29, %v958_v28 }
 0x1fa   : > { %v923_v36 = vmax.f32 %v891_v31, 0.0  ;;  %v895_v37 = vadd.f32 %v894_v34, %v1646_v10  ;;  %v896_v38 = vpop.f32.mrb[7].mxu1 }
 0x1fb   : > { %v924_v39 = vmax.f32 %v893_v33, 0.0  ;;  %v897_v40 = vadd.f32 %v896_v38, %v1651_v12 }
 0x1fc   : > { %v925_v41 = vmax.f32 %v895_v37, 0.0  ;;  %v960_v42 = vmul.f32 %v1655_v17, %v923_v36 }
 0x1fd   : > { %v926_v43 = vmax.f32 %v897_v40, 0.0  ;;  %982 = vadd.xlane.f32.xlu0 %v973_v35  ;;  %v961_v44 = vmul.f32 %v1659_v20, %v924_v39 }
 0x1fe   : > { %v962_v45 = vmul.f32 %v1655_v17, %v925_v41 }
 0x1ff   : > { %v963_v46 = vmul.f32 %v1659_v20, %v926_v43  ;;  %v900_v47 = vpop.f32.mrb[8].mxu1  ;;  %v974_v48 = vadd.f32 %v961_v44, %v960_v42 }
 0x200   : > { %v901_v49 = vadd.f32 %v900_v47, %v1646_v10  ;;  %v902_v50 = vpop.f32.mrb[9].mxu1 }
 0x201   : > { %v903_v51 = vadd.f32 %v902_v50, %v1651_v12  ;;  %984 = vadd.xlane.f32.xlu1 %v974_v48  ;;  %v904_v52 = vpop.f32.mrb[10].mxu1  ;;  %v975_v53 = vadd.f32 %v963_v46, %v962_v45 }
 0x202   : > { %v927_v54 = vmax.f32 %v901_v49, 0.0  ;;  %v905_v55 = vadd.f32 %v904_v52, %v1646_v10  ;;  %v906_v56 = vpop.f32.mrb[11].mxu1 }
 0x203   : > { %v928_v57 = vmax.f32 %v903_v51, 0.0  ;;  %v907_v58 = vadd.f32 %v906_v56, %v1651_v12 }
 0x204   : > { %v964_v59 = vmul.f32 %v1655_v17, %v927_v54  ;;  %v929_v60 = vmax.f32 %v905_v55, 0.0 }
 0x205   : > { %v965_v61 = vmul.f32 %v1659_v20, %v928_v57  ;;  %v930_v62 = vmax.f32 %v907_v58, 0.0  ;;  %986 = vadd.xlane.f32.xlu1 %v975_v53 }
 0x206   : > { %v966_v63 = vmul.f32 %v1655_v17, %v929_v60 }
 0x207   : > { %v967_v0 = vmul.f32 %v1659_v20, %v930_v62  ;;  %v910_v1 = vpop.f32.mrb[12].mxu1  ;;  %v976_v2 = vadd.f32 %v965_v61, %v964_v59 }
 0x208   : > { %v911_v3 = vadd.f32 %v910_v1, %v1646_v10  ;;  %v912_v4 = vpop.f32.mrb[13].mxu1 }
 0x209   : > { %v913_v7 = vadd.f32 %v912_v4, %v1651_v12  ;;  %988 = vadd.xlane.f32.xlu0 %v976_v2  ;;  %v914_v9 = vpop.f32.mrb[14].mxu1  ;;  %v977_v11 = vadd.f32 %v967_v0, %v966_v63 }
 0x20a   : > { %v931_v13 = vmax.f32 %v911_v3, 0.0  ;;  %v915_v14 = vadd.f32 %v914_v9, %v1646_v10  ;;  %v916_v15 = vpop.f32.mrb[15].mxu1  ;;  %v1181_v10 = vld [vmem:[#allocation2] ss:$0 sm:$0xff] }
 0x20b   : > { %v932_v16 = vmax.f32 %v913_v7, 0.0  ;;  %v917_v18 = vadd.f32 %v916_v15, %v1651_v12  ;;  %990 = vadd.xlane.f32.xlu1 %v977_v11 }
 0x20c   : > { %v968_v19 = vmul.f32 %v1655_v17, %v931_v13  ;;  %v933_v21 = vmax.f32 %v915_v14, 0.0 }
 0x20d   : > { %v969_v22 = vmul.f32 %v1659_v20, %v932_v16  ;;  %v934_v5 = vmax.f32 %v917_v18, 0.0 }
 0x20e   : > { %v970_v8 = vmul.f32 %v1655_v17, %v933_v21 }
 0x20f   : > { %v971_v23 = vmul.f32 %v1659_v20, %v934_v5  ;;  %v978_v24 = vadd.f32 %v969_v22, %v968_v19 }
 0x211   : > { %992 = vadd.xlane.f32.xlu0 %v978_v24  ;;  %v979_v25 = vadd.f32 %v971_v23, %v970_v8 }
 0x213   : > { %994 = vadd.xlane.f32.xlu1 %v979_v25 }
 0x286   : > { %v981_v26 = vpop.xlane.xlu0 %980 }
 0x287   : > { %v1003_v27 = vadd.f32 %v1181_v10, %v981_v26 }
 0x289   : > { %1011 = vxpose.xlu0.b32.start [1/8] (short) (narrow) %v1003_v27, 8 }
 0x28a   : > { %v983_v12 = vpop.xlane.xlu0 %982 }
 0x28b   : > { %v1004_v28 = vadd.f32 %v1181_v10, %v983_v12 }
 0x28d   : > { %1012 = vxpose.xlu0.b32.cont [2/8] (short) (narrow) %v1004_v28, 8 }
 0x28e   : > { %v985_v29 = vpop.xlane.xlu1 %984 }
 0x28f   : > { %v1005_v30 = vadd.f32 %v1181_v10, %v985_v29 }
 0x291   : > { %1013 = vxpose.xlu0.b32.cont [3/8] (short) (narrow) %v1005_v30, 8 }
 0x292   : > { %v987_v6 = vpop.xlane.xlu1 %986 }
 0x293   : > { %v1006_v17 = vadd.f32 %v1181_v10, %v987_v6 }
 0x295   : > { %1014 = vxpose.xlu0.b32.cont [4/8] (short) (narrow) %v1006_v17, 8 }
 0x296   : > { %v989_v20 = vpop.xlane.xlu0 %988 }
 0x297   : > { %v1007_v31 = vadd.f32 %v1181_v10, %v989_v20 }
 0x298   : > { %v991_v32 = vpop.xlane.xlu1 %990 }
 0x299   : > { %1015 = vxpose.xlu0.b32.cont [5/8] (short) (narrow) %v1007_v31, 8  ;;  %v1008_v33 = vadd.f32 %v1181_v10, %v991_v32 }
 0x29d   : > { %1016 = vxpose.xlu0.b32.cont [6/8] (short) (narrow) %v1008_v33, 8 }
 0x29e   : > { %v993_v34 = vpop.xlane.xlu0 %992 }
 0x29f   : > { %v1009_v35 = vadd.f32 %v1181_v10, %v993_v34 }
 0x2a0   : > { %v995_v36 = vpop.xlane.xlu1 %994 }
 0x2a1   : > { %1017 = vxpose.xlu0.b32.cont [7/8] (short) (narrow) %v1009_v35, 8  ;;  %v1010_v37 = vadd.f32 %v1181_v10, %v995_v36 }
 0x2a5   : > { %1018 = vxpose.xlu0.b32.end [8/8] (short) (narrow) %v1010_v37, 8 }
 0x309   : > { %v1027_v38 = vpop.trf.xlu0 }
 0x30a   : > { %1044 = vst.msk [vmem:[%s343_s30] sm:$0x1] %vm1043_vm3, %v1027_v38 }
 0x30b   : > { %1310 = shalt.err (!%p1307_p3)
}
 0x30c   : > { %s1311_s23 = scalar_lea.hbm %s1696_s17, 16  ;;  %s1315_s29 = scalar_lea.hbm %s1747_s9, 32 }
 0x30d   : > { %p1312_p4 = scmp.ne.s32.totalorder %s1696_s17, %s1311_s23  ;;  %p1316_p9 = scmp.lt.u32.totalorder %s1696_s17, %s1747_s9 }
 0x30e   : > { %p1317_p10 = scmp.lt.u32.totalorder %s1315_s29, %s1311_s23  ;;  %p1319_p12 = scmp.lt.u32.totalorder %s1311_s23, %s1696_s17 }
 0x30f   : > { %p1313_p7 = pnand %p1312_p4, %p1454_p5 }
 0x310   : > { %p1318_p11 = por %p1317_p10, %p1316_p9 }
 0x311   : > { %p1314_p8 = pneg %p1313_p7 }
 0x312   : > { %p1320_p13 = por %p1319_p12, %p1318_p11 }
 0x314   : > { %p1321_p0 = pnand %p1320_p13, %p1314_p8 }
 0x316   : > { %1324 = shalt.err (!%p1321_p0)
}
 0x317   : > { %1201 = dma.vmem_to_hbm [thread:$0]  (%p1454_p5), %s1698_s24, 16, %s1696_s17, %s1046_s15  }
 0x318 PF: > { %p1207_p1 = scmp.ge.s32.totalorder %s1359_s14, 2  ;;  %s1070_s10 = sand.u32 1, %s1347_s11  }
 0x319   : > { %s1071_s18 = scalar_lea.sflag [#allocation4], %s1070_s10 }
 0x31a   : > { %p1204_p2 = pnand %p1207_p1, %p1458_p6 }
 0x31c   : > { %1342 = dma.done.wait (!%p1204_p2), %s1071_s18, 16  }
 0x31d   : > { %1344 = vsyncadd (!%p1204_p2), %s1071_s18, 4294967280  ;;  %p21_p3 = scmp.ge.s32.totalorder %s1441_s16, 4   ;;  %s1750_s11 = smov %s1351_s12 }
 0x31e   : > { %s1751_s12 = smov %s1355_s13  ;;  %s1752_s13 = smov %s1452_s19 }
 0x31f   : > { %s1753_s14 = smov %s1441_s16  ;;  %23 = sbr.rel (!%p21_p3) target bundleno = 6 (0x6), region = 94 }
 0x326   :  { %1075 = vsyncpa [#allocation4], 1 }
 0x327   :  { %1077 = vsyncpa [#allocation4 + $0x1], 1 }

</bundles_post_ra>
